<compile_context>
chip_gen: v7x
topology: tpu7x:2x2x1
jax: 0.10.0
libtpu: 0.0.40
codegen_flags: <defaults>
</compile_context>

<pallas_src>
import numpy as np
import jax
import jax.numpy as jnp
from jax.experimental import pallas as pl
from jax.experimental.pallas import tpu as pltpu


def _mymodel1_kernel(x_ref,             # VMEM (tb, 25)  natural row-major input
                     cmat_ref, cb_ref,  # VMEM (16, 25), (1, 1)   folded conv
                     w1_ref, b1_ref,    # VMEM (12, 16), (12, 1)
                     w2_ref, b2_ref,    # VMEM (5, 12),  (5, 1)
                     w3_ref, b3_ref,    # VMEM (10, 5),  (10, 1)
                     out_ref):          # VMEM (tb, 10)  natural row-major output
    # Re-orient to the lane-dense (features, batch) layout on-chip: the XLU
    # transpose uses the otherwise mostly-idle vector-extended slots and is
    # hidden under the input DMA, while the HBM blocks stay fully contiguous.
    xt = x_ref[...].T                                                   # (25, tb)

    # conv2d(1->1, 2x2, valid) folded into one (16,25) matmul + bias, then relu.
    h = jnp.dot(cmat_ref[...], xt, preferred_element_type=jnp.float32) + cb_ref[...]
    h = jnp.maximum(h, 0.0)                                             # (16, tb)

    h = jnp.dot(w1_ref[...], h, preferred_element_type=jnp.float32) + b1_ref[...]
    h = jnp.maximum(h, 0.0)                                             # (12, tb)

    h = jnp.dot(w2_ref[...], h, preferred_element_type=jnp.float32) + b2_ref[...]
    h = jnp.maximum(h, 0.0)                                             # (5, tb)

    o = jnp.dot(w3_ref[...], h, preferred_element_type=jnp.float32) + b3_ref[...]
    out_ref[...] = o.T                                                  # (tb, 10)


def _fold_conv_to_matrix(conv_w):
    """Fold the (1,1,2,2) OIHW conv weight into a dense (16, 25) matrix M such
    that conv_out_flat = M @ x_flat, with x_flat / conv_out_flat being the
    row-major flattenings of the 5x5 input and 4x4 output (torch.flatten order).
    """
    w_flat = conv_w.reshape(4)  # [w00, w01, w10, w11]
    rows, cols, widx = [], [], []
    for oh in range(4):
        for ow in range(4):
            for kh in range(2):
                for kw in range(2):
                    rows.append(oh * 4 + ow)
                    cols.append((oh + kh) * 5 + (ow + kw))
                    widx.append(kh * 2 + kw)
    rows = jnp.asarray(rows, jnp.int32)
    cols = jnp.asarray(cols, jnp.int32)
    widx = np.asarray(widx)
    return jnp.zeros((16, 25), jnp.float32).at[rows, cols].set(w_flat[widx])


def init_params(key):
    """Deterministic synthetic parameters matching MyModel1's shapes."""
    ks = jax.random.split(key, 8)
    return {
        # PyTorch conv weight layout: (out_c, in_c, kh, kw) = (1, 1, 2, 2)
        "conv_w": jax.random.normal(ks[0], (1, 1, 2, 2), jnp.float32) * 0.5,
        "conv_b": jax.random.normal(ks[1], (1,), jnp.float32) * 0.1,
        # PyTorch Linear weight layout: (out_features, in_features)
        "fc1_w": jax.random.normal(ks[2], (12, 16), jnp.float32) * 0.25,
        "fc1_b": jax.random.normal(ks[3], (12,), jnp.float32) * 0.1,
        "fc2_w": jax.random.normal(ks[4], (5, 12), jnp.float32) * 0.25,
        "fc2_b": jax.random.normal(ks[5], (5,), jnp.float32) * 0.1,
        "fc3_w": jax.random.normal(ks[6], (10, 5), jnp.float32) * 0.25,
        "fc3_b": jax.random.normal(ks[7], (10,), jnp.float32) * 0.1,
    }


def _round_up(x, m):
    return ((x + m - 1) // m) * m


def mymodel1_forward(x, params, *, tb=None):
    """x: (B, 1, 5, 5) NCHW float32  ->  (B, 10) float32.

    tb: batch-tile rows per grid step.  Default: min(16384, ceil(B/2) rounded
    up to 128), i.e. large enough to amortize the ~0.35 us per-step pipeline
    overhead but always leaving >= 2 grid steps so v7x's two TensorCores both
    get work.  Sweep 8192/16384/32768 per generation for the last few %.
    """
    B = x.shape[0]
    assert x.shape[1:] == (1, 5, 5), "MyModel1 implies a (B, 1, 5, 5) input"

    # Free reshape (contiguous); no HBM transpose pass in the wrapper.
    x2 = x.reshape(B, 25)                                   # (B, 25) row-major

    cmat = _fold_conv_to_matrix(params["conv_w"])           # (16, 25)
    cb = params["conv_b"].reshape(1, 1)
    w1, b1 = params["fc1_w"], params["fc1_b"].reshape(12, 1)   # (12,16), (12,1)
    w2, b2 = params["fc2_w"], params["fc2_b"].reshape(5, 1)    # (5,12),  (5,1)
    w3, b3 = params["fc3_w"], params["fc3_b"].reshape(10, 1)   # (10,5),  (10,1)

    if tb is None:
        # Large tile, but keep >= 2 grid steps when B allows (v7x megacore).
        tb = min(16384, _round_up(pl.cdiv(B, 2), 128))
    if tb >= B:
        tb = B                 # single full-extent block (legal for any B)
    else:
        assert tb % 8 == 0, "batch tile must be a multiple of 8 when gridded"
    grid = (pl.cdiv(B, tb),)

    # Weights/biases: constant block index => stay VMEM-resident across steps.
    def full(shape):
        return pl.BlockSpec(shape, lambda i: (0, 0))

    flops = 2 * B * (16 * 25 + 12 * 16 + 5 * 12 + 10 * 5)
    param_bytes = 4 * (16 * 25 + 1 + 12 * 16 + 12 + 5 * 12 + 5 + 10 * 5 + 10)
    cost = pl.CostEstimate(
        flops=flops,
        transcendentals=0,
        bytes_accessed=B * (25 + 10) * 4 + param_bytes,
    )

    out = pl.pallas_call(
        _mymodel1_kernel,
        out_shape=jax.ShapeDtypeStruct((B, 10), jnp.float32),
        grid=grid,
        in_specs=[
            pl.BlockSpec((tb, 25), lambda i: (i, 0)),   # batch-tiled input, contiguous HBM
            full((16, 25)), full((1, 1)),               # folded conv
            full((12, 16)), full((12, 1)),              # fc1
            full((5, 12)), full((5, 1)),                # fc2
            full((10, 5)), full((10, 1)),               # fc3
        ],
        out_specs=pl.BlockSpec((tb, 10), lambda i: (i, 0)),
        compiler_params=pltpu.CompilerParams(
            dimension_semantics=("parallel",),          # shard batch tiles across TCs (v7x)
            vmem_limit_bytes=48 * 1024 * 1024,          # headroom for tb=16K blocks + temps,
                                                        # safe on v5e/v6e (128 MiB) & v7x (64 MiB)
        ),
        cost_estimate=cost,
    )(x2, cmat, cb, w1, b1, w2, b2, w3, b3)

    return out                                          # (B, 10), no wrapper transpose


def mymodel1_reference(x, params):
    """Pure-JAX reference for correctness checking."""
    conv = jax.lax.conv_general_dilated(
        x, params["conv_w"], window_strides=(1, 1), padding="VALID",
        dimension_numbers=("NCHW", "OIHW", "NCHW"),
    ) + params["conv_b"].reshape(1, 1, 1, 1)
    h = jax.nn.relu(conv).reshape(x.shape[0], -1)              # (B, 16)
    h = jax.nn.relu(h @ params["fc1_w"].T + params["fc1_b"])   # (B, 12)
    h = jax.nn.relu(h @ params["fc2_w"].T + params["fc2_b"])   # (B, 5)
    return h @ params["fc3_w"].T + params["fc3_b"]             # (B, 10)


if __name__ == "__main__":
    key = jax.random.PRNGKey(0)
    k_x, k_p = jax.random.split(key)
    params = init_params(k_p)

    # Small-shape smoke test (single full-extent block), batch=2, NCHW.
    x_small = jax.random.normal(k_x, (2, 1, 5, 5), jnp.float32)
    out_small = jax.block_until_ready(mymodel1_forward(x_small, params))
    ref_small = mymodel1_reference(x_small, params)
    assert out_small.shape == (2, 10)
    assert jnp.allclose(out_small, ref_small, atol=1e-4, rtol=1e-4), \
        "mismatch vs reference (small batch)"

    # Exercise the gridded / pipelined path with the default tile heuristic:
    # B=384 -> tb=256 -> 2 grid steps, including a partial (masked) last block.
    x_big = jax.random.normal(k_x, (384, 1, 5, 5), jnp.float32)
    out_big = jax.block_until_ready(mymodel1_forward(x_big, params))
    ref_big = mymodel1_reference(x_big, params)
    assert out_big.shape == (384, 10)
    assert jnp.allclose(out_big, ref_big, atol=1e-4, rtol=1e-4), \
        "mismatch vs reference (gridded batch, partial last tile)"

    print("KERNEL_OK")
</pallas_src>

<mosaic_0001>
module attributes {stable_mosaic.version = 11 : i64} {
  func.func @_mymodel1_kernel(%arg0: i32, %arg1: memref<2x25xf32, #tpu.memory_space<vmem>>, %arg2: memref<16x25xf32, #tpu.memory_space<vmem>>, %arg3: memref<1x1xf32, #tpu.memory_space<vmem>>, %arg4: memref<12x16xf32, #tpu.memory_space<vmem>>, %arg5: memref<12x1xf32, #tpu.memory_space<vmem>>, %arg6: memref<5x12xf32, #tpu.memory_space<vmem>>, %arg7: memref<5x1xf32, #tpu.memory_space<vmem>>, %arg8: memref<10x5xf32, #tpu.memory_space<vmem>>, %arg9: memref<10x1xf32, #tpu.memory_space<vmem>>, %arg10: memref<2x10xf32, #tpu.memory_space<vmem>>) attributes {dimension_semantics = [#tpu.dimension_semantics<parallel>], iteration_bounds = array<i64: 1>, scalar_prefetch = 0 : i64, scratch_operands = 0 : i64, tpu.core_type = #tpu.core_type<tc>, window_params = [{transform_indices = @transform_0, window_bounds = array<i64: 2, 25>}, {pipeline_mode = #tpu.pipeline_mode<synchronous>, transform_indices = @transform_1, window_bounds = array<i64: 16, 25>}, {pipeline_mode = #tpu.pipeline_mode<synchronous>, transform_indices = @transform_2, window_bounds = array<i64: 1, 1>}, {pipeline_mode = #tpu.pipeline_mode<synchronous>, transform_indices = @transform_3, window_bounds = array<i64: 12, 16>}, {pipeline_mode = #tpu.pipeline_mode<synchronous>, transform_indices = @transform_4, window_bounds = array<i64: 12, 1>}, {pipeline_mode = #tpu.pipeline_mode<synchronous>, transform_indices = @transform_5, window_bounds = array<i64: 5, 12>}, {pipeline_mode = #tpu.pipeline_mode<synchronous>, transform_indices = @transform_6, window_bounds = array<i64: 5, 1>}, {pipeline_mode = #tpu.pipeline_mode<synchronous>, transform_indices = @transform_7, window_bounds = array<i64: 10, 5>}, {pipeline_mode = #tpu.pipeline_mode<synchronous>, transform_indices = @transform_8, window_bounds = array<i64: 10, 1>}, {transform_indices = @transform_9, window_bounds = array<i64: 2, 10>}]} {
    %c0 = arith.constant 0 : index
    %c0_0 = arith.constant 0 : index
    %0 = vector.load %arg1[%c0, %c0_0] : memref<2x25xf32, #tpu.memory_space<vmem>>, vector<2x25xf32>
    %1 = tpu.transpose %0, [1, 0] : vector<2x25xf32> -> vector<25x2xf32>
    %c0_1 = arith.constant 0 : index
    %c0_2 = arith.constant 0 : index
    %2 = vector.load %arg2[%c0_1, %c0_2] : memref<16x25xf32, #tpu.memory_space<vmem>>, vector<16x25xf32>
    %cst = arith.constant dense<0.000000e+00> : vector<16x2xf32>
    %3 = tpu.matmul %2, %1, %cst {dimension_numbers = #tpu.dot_dimension_numbers<[1], [0], [0], [1], [0, 0, 1, 1], [], []>} : vector<16x25xf32>, vector<25x2xf32>, vector<16x2xf32> -> vector<16x2xf32>
    %c0_3 = arith.constant 0 : index
    %c0_4 = arith.constant 0 : index
    %4 = vector.load %arg3[%c0_3, %c0_4] : memref<1x1xf32, #tpu.memory_space<vmem>>, vector<1x1xf32>
    %5 = vector.broadcast %4 : vector<1x1xf32> to vector<16x2xf32>
    %6 = arith.addf %3, %5 : vector<16x2xf32>
    %cst_5 = arith.constant 0.000000e+00 : f32
    %7 = vector.broadcast %cst_5 : f32 to vector<16x2xf32>
    %8 = arith.maximumf %6, %7 : vector<16x2xf32>
    %c0_6 = arith.constant 0 : index
    %c0_7 = arith.constant 0 : index
    %9 = vector.load %arg4[%c0_6, %c0_7] : memref<12x16xf32, #tpu.memory_space<vmem>>, vector<12x16xf32>
    %cst_8 = arith.constant dense<0.000000e+00> : vector<12x2xf32>
    %10 = tpu.matmul %9, %8, %cst_8 {dimension_numbers = #tpu.dot_dimension_numbers<[1], [0], [0], [1], [0, 0, 1, 1], [], []>} : vector<12x16xf32>, vector<16x2xf32>, vector<12x2xf32> -> vector<12x2xf32>
    %c0_9 = arith.constant 0 : index
    %c0_10 = arith.constant 0 : index
    %11 = vector.load %arg5[%c0_9, %c0_10] : memref<12x1xf32, #tpu.memory_space<vmem>>, vector<12x1xf32>
    %12 = vector.broadcast %11 : vector<12x1xf32> to vector<12x2xf32>
    %13 = arith.addf %10, %12 : vector<12x2xf32>
    %cst_11 = arith.constant 0.000000e+00 : f32
    %14 = vector.broadcast %cst_11 : f32 to vector<12x2xf32>
    %15 = arith.maximumf %13, %14 : vector<12x2xf32>
    %c0_12 = arith.constant 0 : index
    %c0_13 = arith.constant 0 : index
    %16 = vector.load %arg6[%c0_12, %c0_13] : memref<5x12xf32, #tpu.memory_space<vmem>>, vector<5x12xf32>
    %cst_14 = arith.constant dense<0.000000e+00> : vector<5x2xf32>
    %17 = tpu.matmul %16, %15, %cst_14 {dimension_numbers = #tpu.dot_dimension_numbers<[1], [0], [0], [1], [0, 0, 1, 1], [], []>} : vector<5x12xf32>, vector<12x2xf32>, vector<5x2xf32> -> vector<5x2xf32>
    %c0_15 = arith.constant 0 : index
    %c0_16 = arith.constant 0 : index
    %18 = vector.load %arg7[%c0_15, %c0_16] : memref<5x1xf32, #tpu.memory_space<vmem>>, vector<5x1xf32>
    %19 = vector.broadcast %18 : vector<5x1xf32> to vector<5x2xf32>
    %20 = arith.addf %17, %19 : vector<5x2xf32>
    %cst_17 = arith.constant 0.000000e+00 : f32
    %21 = vector.broadcast %cst_17 : f32 to vector<5x2xf32>
    %22 = arith.maximumf %20, %21 : vector<5x2xf32>
    %c0_18 = arith.constant 0 : index
    %c0_19 = arith.constant 0 : index
    %23 = vector.load %arg8[%c0_18, %c0_19] : memref<10x5xf32, #tpu.memory_space<vmem>>, vector<10x5xf32>
    %cst_20 = arith.constant dense<0.000000e+00> : vector<10x2xf32>
    %24 = tpu.matmul %23, %22, %cst_20 {dimension_numbers = #tpu.dot_dimension_numbers<[1], [0], [0], [1], [0, 0, 1, 1], [], []>} : vector<10x5xf32>, vector<5x2xf32>, vector<10x2xf32> -> vector<10x2xf32>
    %c0_21 = arith.constant 0 : index
    %c0_22 = arith.constant 0 : index
    %25 = vector.load %arg9[%c0_21, %c0_22] : memref<10x1xf32, #tpu.memory_space<vmem>>, vector<10x1xf32>
    %26 = vector.broadcast %25 : vector<10x1xf32> to vector<10x2xf32>
    %27 = arith.addf %24, %26 : vector<10x2xf32>
    %28 = tpu.transpose %27, [1, 0] : vector<10x2xf32> -> vector<2x10xf32>
    %c0_23 = arith.constant 0 : index
    %c0_24 = arith.constant 0 : index
    %29 = vector.load %arg10[%c0_23, %c0_24] : memref<2x10xf32, #tpu.memory_space<vmem>>, vector<2x10xf32>
    tpu.vector_store %arg10[%c0_23, %c0_24], %28 {strides = array<i32>} : memref<2x10xf32, #tpu.memory_space<vmem>>, vector<2x10xf32>,
    return
  }
  func.func @transform_0(%arg0: i32) -> (i32, i32) {
    %c0_i32 = arith.constant 0 : i32
    %c0_i32_0 = arith.constant 0 : i32
    return %arg0, %c0_i32 : i32, i32
  }
  func.func @transform_1(%arg0: i32) -> (i32, i32) {
    %c0_i32 = arith.constant 0 : i32
    %c0_i32_0 = arith.constant 0 : i32
    %c0_i32_1 = arith.constant 0 : i32
    return %c0_i32, %c0_i32_0 : i32, i32
  }
  func.func @transform_2(%arg0: i32) -> (i32, i32) {
    %c0_i32 = arith.constant 0 : i32
    %c0_i32_0 = arith.constant 0 : i32
    %c0_i32_1 = arith.constant 0 : i32
    return %c0_i32, %c0_i32_0 : i32, i32
  }
  func.func @transform_3(%arg0: i32) -> (i32, i32) {
    %c0_i32 = arith.constant 0 : i32
    %c0_i32_0 = arith.constant 0 : i32
    %c0_i32_1 = arith.constant 0 : i32
    return %c0_i32, %c0_i32_0 : i32, i32
  }
  func.func @transform_4(%arg0: i32) -> (i32, i32) {
    %c0_i32 = arith.constant 0 : i32
    %c0_i32_0 = arith.constant 0 : i32
    %c0_i32_1 = arith.constant 0 : i32
    return %c0_i32, %c0_i32_0 : i32, i32
  }
  func.func @transform_5(%arg0: i32) -> (i32, i32) {
    %c0_i32 = arith.constant 0 : i32
    %c0_i32_0 = arith.constant 0 : i32
    %c0_i32_1 = arith.constant 0 : i32
    return %c0_i32, %c0_i32_0 : i32, i32
  }
  func.func @transform_6(%arg0: i32) -> (i32, i32) {
    %c0_i32 = arith.constant 0 : i32
    %c0_i32_0 = arith.constant 0 : i32
    %c0_i32_1 = arith.constant 0 : i32
    return %c0_i32, %c0_i32_0 : i32, i32
  }
  func.func @transform_7(%arg0: i32) -> (i32, i32) {
    %c0_i32 = arith.constant 0 : i32
    %c0_i32_0 = arith.constant 0 : i32
    %c0_i32_1 = arith.constant 0 : i32
    return %c0_i32, %c0_i32_0 : i32, i32
  }
  func.func @transform_8(%arg0: i32) -> (i32, i32) {
    %c0_i32 = arith.constant 0 : i32
    %c0_i32_0 = arith.constant 0 : i32
    %c0_i32_1 = arith.constant 0 : i32
    return %c0_i32, %c0_i32_0 : i32, i32
  }
  func.func @transform_9(%arg0: i32) -> (i32, i32) {
    %c0_i32 = arith.constant 0 : i32
    %c0_i32_0 = arith.constant 0 : i32
    return %arg0, %c0_i32 : i32, i32
  }
}

</mosaic_0001>

<bundles_post_ra>
// kernel: tpu_custom_call.1
= control target key start
LH: loop header
LB: loop body
LE: loop exit
PB: predicated region body
PF: predicated region fallthrough
CT: control target
= control target key end

     0   :  { %s667_s0 = inlined_call_operand.vmem [shape: f32[2,25], index: 0, kind: input, shape index: {}]   ;;  %s668_s1 = inlined_call_operand.vmem [shape: f32[16,25], index: 1, kind: input, shape index: {}]   ;;  %s669_s2 = inlined_call_operand.<no memory space> [shape: f32[1,1], index: 2, kind: input, shape index: {}]   ;;  %s670_s3 = inlined_call_operand.vmem [shape: f32[12,16], index: 3, kind: input, shape index: {}]   ;;  %s671_s4 = inlined_call_operand.vmem [shape: f32[12,1], index: 4, kind: input, shape index: {}]   ;;  %s672_s5 = inlined_call_operand.vmem [shape: f32[5,12], index: 5, kind: input, shape index: {}]   ;;  %s673_s6 = inlined_call_operand.vmem [shape: f32[5,1], index: 6, kind: input, shape index: {}]   ;;  %s674_s7 = inlined_call_operand.vmem [shape: f32[10,5], index: 7, kind: input, shape index: {}]   ;;  %s675_s8 = inlined_call_operand.vmem [shape: f32[10,1], index: 8, kind: input, shape index: {}]   ;;  %s676_s9 = inlined_call_operand.hbm [shape: f32[2,10], index: 9, kind: output, shape index: {}]  }
   0x1   :  { %v14_v0 = vstv %s669_s2 }
   0x2   :  { %15 = vst [vmem:[#allocation2] sm:$0x1] %v14_v0 }
   0x3   :  { %v35_v1 = vld [vmem:[%s667_s0] sm:$0x3]  ;;  %vm48_vm0 = vcmask 203776   ;;  %v37_v4 = vld [vmem:[%s668_s1 + $0x8] sm:$0xff]  ;;  %v555_v5 = vmov 0  }
   0x4   :  { %v36_v2 = vld [vmem:[%s668_s1] sm:$0xff]  ;;  %491 = vmatprep.subr.msk.mxu0 %vm48_vm0, %v35_v1  ;;  %529 = vset.pattern.permute.xlu0 %v555_v5 }
   0x5   :  { %493 = vmatprep.mubr.msk.f32.mxu0 %vm48_vm0, %v36_v2  ;;  %492 = vmatpush3.xpose.msk.msra.mxu0 %vm48_vm0, %v35_v1 }
   0x9   :  { %v467_v3 = vld [vmem:[#allocation2] ss:$0 sm:$0xff] }
   0xa   :  { %16 = vsyncpa [#allocation4], 0  ;;  %45 = vperm.xlu0 %529, %v467_v3   ;;  %530 = vset.pattern.permute.xlu1 %v555_v5  ;;  %v137_v6 = vld [vmem:[%s671_s4] sm:$0xff]  ;;  %vm149_vm1 = vcmask 130048   ;;  %v138_v9 = vld [vmem:[%s671_s4 + $0x8] sm:$0xf] }
   0xb   :  { %494 = vmatmul.mubr.msk.f32.vlgmr.msra.gmra.mrb[0].mxu0 %vm48_vm0, %v37_v4  ;;  %v321_v7 = vld [vmem:[%s675_s8] sm:$0xff]  ;;  %146 = vperm.xlu1 %530, %v138_v9   ;;  %v322_v11 = vld [vmem:[%s675_s8 + $0x8] sm:$0x3]  ;;  %v556_v21 = vmov 0.0|0.0   ;;  %vm557_vm2 = vmmov 0   ;;  %v558_v22 = vmov 0.0  }
   0xc   :  { %v135_v8 = vld [vmem:[%s670_s3] sm:$0xff]  ;;  %v136_v20 = vld [vmem:[%s670_s3 + $0x8] sm:$0xf]  ;;  %519 = vmatprep.subr.bf16.mxu0 %v556_v21  ;;  %507 = vmatprep.mubr.msk.f32.mxu0 %vm557_vm2, %v558_v22  ;;  %vm244_vm3 = vcmask 1043456   ;;  %vm559_vm4 = vmmov 1   ;;  %vm240_vm6 = vcmask 97280  }
   0xd   :  { %500 = vmatprep.mubr.msk.f32.mxu1 %vm149_vm1, %v135_v8  ;;  %v234_v10 = vld [vmem:[%s673_s6] sm:$0x1f]  ;;  %vm521_vm5 = vmpackc.low %vm244_vm3, %vm559_vm4  ;;  %vm333_vm7 = vcmask 39936   ;;  %vm340_vm8 = vcmask 1044480   ;;  %v320_v39 = vld [vmem:[%s674_s7 + $0x8] sm:$0x3] }
   0xe   :  { %141 = vperm.xlu0 %529, %v137_v6   ;;  %v233_v32 = vld [vmem:[%s672_s5] sm:$0x1f]  ;;  %s560_s5 = smov [#allocation3]   ;;  %vm451_vm9 = vcmask 74752  }
   0xf   :  { %237 = vperm.xlu1 %530, %v234_v10   ;;  %v319_v33 = vld [vmem:[%s674_s7] sm:$0xff]  ;;  %s459_s30 = sshll.u32 %s560_s5, 4  ;;  %s460_s30 = int_to_ptr.vmem [resolvable:$true] %s459_s30 }
  0x10   :  { %s531_s10 = scalar_lea.vmem %s460_s30, 32  ;;  %p536_p1 = scmp.lt.s32.totalorder %s460_s30, %s460_s30 }
  0x11   :  { %p532_p0 = scmp.ne.s32.totalorder %s460_s30, %s531_s10  ;;  %p537_p2 = scmp.lt.s32.totalorder %s531_s10, %s531_s10 }
  0x12   :  { %325 = vperm.xlu0 %529, %v321_v7  }
  0x13   :  { %330 = vperm.xlu1 %530, %v322_v11   ;;  %p538_p3 = por %p537_p2, %p536_p1 }
  0x15   :  { %p539_p4 = pnand %p538_p3, %p532_p0 }
  0x89   :  { %v46_v12 = vpop.permute.xlu0 %45 }
  0x8a   :  { %v147_v23 = vpop.permute.xlu1 %146 }
  0x8d   :  { %v142_v25 = vpop.permute.xlu0 %141 }
  0x8e   :  { %v238_v34 = vpop.permute.xlu1 %237 }
  0x91   :  { %v326_v41 = vpop.permute.xlu0 %325 }
  0x92   :  { %v331_v44 = vpop.permute.xlu1 %330 }
  0xde   :  { %v495_v13 = vpop.f32.mrb[0].mxu0 }
  0xdf   :  { %v130_v14 = vadd.f32 %v495_v13, %v46_v12  ;;  %v124_v15 = vpop.f32.mrb[1].mxu0 }
  0xe0   :  { %v125_v16 = vadd.f32 %v124_v15, %v46_v12 }
  0xe1   :  { %v134_v17 = vmax.f32 %v130_v14, 0.0 }
  0xe2   :  { %v133_v18 = vmax.f32 %v125_v16, 0.0 }
  0xe4   :  { %v515_v19 = vpack.c.bf16 %v134_v17, %v133_v18 }
  0xe6   :  { %516 = vmatprep.subr.bf16.mxu1 %v515_v19 }
  0xe7   :  { %518 = vmatpush3.bf16.msra.mxu1 %v515_v19 }
  0xea   :  { %501 = vmatmul.mubr.msk.f32.vlgmr.msra.gmra.mrb[0].mxu1 %vm149_vm1, %v136_v20 }
  0xeb   :  { %512 = vmatprep.mubr.msk.f32.mxu1 %vm333_vm7, %v319_v33 }
 0x1bd   :  { %v502_v24 = vpop.f32.mrb[0].mxu1 }
 0x1be   :  { %v228_v26 = vadd.f32 %v502_v24, %v147_v23  ;;  %v222_v27 = vpop.f32.mrb[1].mxu1 }
 0x1bf   :  { %v223_v28 = vadd.f32 %v222_v27, %v142_v25 }
 0x1c0   :  { %v232_v29 = vmax.f32 %v228_v26, 0.0 }
 0x1c1   :  { %v231_v30 = vmax.f32 %v223_v28, 0.0 }
 0x1c3   :  { %v520_v31 = vpack.c.bf16 %v232_v29, %v231_v30 }
 0x1c5   :  { %522 = vmatpush3.bf16.msk.msra.mxu0 %vm521_vm5, %v520_v31 }
 0x1c8   :  { %508 = vmatmul.mubr.msk.f32.vlgmr.msra.gmra.mrb[2].mxu0 %vm240_vm6, %v233_v32 }
 0x29b   :  { %v314_v35 = vpop.f32.mrb[2].mxu0 }
 0x29c   :  { %v315_v36 = vadd.f32 %v314_v35, %v238_v34  ;;  %v509_v37 = vpop.f32.mrb[3].mxu0 }
 0x29e   :  { %v318_v38 = vmax.f32 %v315_v36, 0.0 }
 0x2a0   :  { %510 = vmatprep.subr.msk.mxu1 %vm340_vm8, %v318_v38 }
 0x2a1   :  { %511 = vmatpush3.msk.msra.mxu1 %vm340_vm8, %v318_v38 }
 0x2a2   :  { %513 = vmatmul.mubr.msk.f32.vlgmr.msra.gmra.mrb[2].mxu1 %vm333_vm7, %v320_v39 }
 0x375   :  { %v514_v40 = vpop.f32.mrb[2].mxu1 }
 0x376   :  { %v410_v42 = vpop.f32.mrb[3].mxu1  ;;  %v416_v45 = vadd.f32 %v514_v40, %v331_v44 }
 0x377   :  { %v411_v43 = vadd.f32 %v410_v42, %v326_v41 }
 0x379   :  { %419 = vxpose.xlu0.b32.start [1/2] (short) (narrow) %v411_v43, 8 }
 0x37d   :  { %420 = vxpose.xlu0.b32.end [2/2] (short) (narrow) %v416_v45, 8 }
 0x3f9   :  { %v435_v46 = vpop.trf.xlu0 }
 0x3fa   :  { %452 = vst.msk [vmem:[#allocation3] sm:$0x3] %vm451_vm9, %v435_v46 }
 0x3fb   :  { %542 = shalt.err (!%p539_p4)
}
 0x3fc   :  { %s543_s12 = scalar_lea.hbm %s676_s9, 32 }
 0x3fd   :  { %p544_p5 = scmp.ne.s32.totalorder %s676_s9, %s543_s12  ;;  %p547_p6 = scmp.lt.u32.totalorder %s543_s12, %s676_s9 }
 0x3ff   :  { %p549_p7 = pnand %p547_p6, %p544_p5 }
 0x401   :  { %552 = shalt.err (!%p549_p7)
}
 0x402   :  { %462 = dma.vmem_to_hbm [thread:$0]  %s460_s30, 32, %s676_s9, [#allocation4]  }
 0x403   :  { %553 = dma.done.wait [#allocation4], 32  }
 0x404   :  { %554 = vsyncadd [#allocation4], 4294967264 }
 0x405   :  { %466 = vsyncpa [#allocation4], 1 }

</bundles_post_ra>
